<compile_context>
chip_gen: v6e
topology: v6e:2x2x1
jax: 0.10.0
libtpu: 0.0.40
codegen_flags: <defaults>
</compile_context>

<pallas_src>
import jax
import jax.numpy as jnp
from jax.experimental import pallas as pl
from jax.experimental.pallas import tpu as pltpu

_LANE = 128


def _round_up(n, m):
    return ((n + m - 1) // m) * m


def _fused_mlp_kernel(*refs):
    """refs = (x_ref, w1, b1, w2, b2, ..., wN, bN, o_ref); all VMEM-resident.

    Computes  h = relu(h @ Wi + bi)  for hidden layers and a plain linear for
    the output layer, entirely on-chip.
    """
    x_ref = refs[0]
    o_ref = refs[-1]
    wb_refs = refs[1:-1]
    n_layers = len(wb_refs) // 2

    h = x_ref[...]                                    # (B, F_pad) float32
    for i in range(n_layers):
        w = wb_refs[2 * i][...]                       # (IN_pad, OUT_pad) bf16
        b = wb_refs[2 * i + 1][...]                   # (1, OUT_pad)      f32
        h = jnp.dot(h.astype(jnp.bfloat16), w,
                    preferred_element_type=jnp.float32) + b
        if i < n_layers - 1:                          # hidden layers: ReLU
            h = jnp.maximum(h, 0.0)
    o_ref[...] = h.astype(o_ref.dtype)


def fused_mlp(x, padded_params):
    """Whole MLP in one Pallas kernel. Returns padded (B, OUT_pad) float32."""
    B = x.shape[0]
    out_pad = padded_params[-1][0].shape[1]
    flat = []
    for w, b in padded_params:
        flat.extend((w, b))
    vmem = lambda: pl.BlockSpec(memory_space=pltpu.MemorySpace.VMEM)
    return pl.pallas_call(
        _fused_mlp_kernel,
        out_shape=jax.ShapeDtypeStruct((B, out_pad), jnp.float32),
        in_specs=[vmem() for _ in range(1 + len(flat))],
        out_specs=vmem(),
    )(x, *flat)


class MLPNetPallas:
    """JAX/Pallas equivalent of MLPNet(actv='ReLU()', ...)."""
    # TODO(synk): only ReLU() is implemented for `actv`; the PyTorch module
    # eval()s an arbitrary nn activation string.

    def __init__(self, key, input_feature_num, hidden_unit_nums,
                 output_feature_num):
        self.input_feature_num = input_feature_num
        self.output_feature_num = output_feature_num
        # (W bf16 (IN_pad, OUT_pad), b f32 (1, OUT_pad)) per layer; zero-padded
        # so padded activation columns stay exactly zero through every layer.
        self.padded_params = []
        in_num = input_feature_num
        dims = list(hidden_unit_nums) + [output_feature_num]
        for out_num in dims:
            key, kw, kb = jax.random.split(key, 3)
            # PyTorch nn.Linear default init: U(-1/sqrt(in), 1/sqrt(in))
            bound = 1.0 / float(in_num) ** 0.5
            w = jax.random.uniform(kw, (in_num, out_num), jnp.float32,
                                   -bound, bound)
            b = jax.random.uniform(kb, (out_num,), jnp.float32, -bound, bound)
            in_pad = _round_up(in_num, _LANE)
            out_pad = _round_up(out_num, _LANE)
            wp = jnp.zeros((in_pad, out_pad), jnp.float32)
            wp = wp.at[:in_num, :out_num].set(w)
            bp = jnp.zeros((1, out_pad), jnp.float32).at[0, :out_num].set(b)
            self.padded_params.append((wp.astype(jnp.bfloat16), bp))
            in_num = out_num
        self._forward = jax.jit(self._forward_impl)

    def _forward_impl(self, x):
        # x.view(-1, input_feature_num)
        x = x.reshape(-1, self.input_feature_num).astype(jnp.float32)
        f = self.input_feature_num
        f_pad = _round_up(f, _LANE)
        if f_pad != f:
            x = jnp.pad(x, ((0, 0), (0, f_pad - f)))
        y = fused_mlp(x, self.padded_params)
        return y[:, :self.output_feature_num]

    def __call__(self, x):
        return self._forward(x)


if __name__ == "__main__":
    key = jax.random.PRNGKey(0)
    key, k_x, k_p = jax.random.split(key, 3)

    # Small shapes consistent with the forward: x is flattened to
    # (-1, input_feature_num).
    B, C, H, W = 2, 4, 16, 16
    input_feature_num = C * H * W          # 1024
    hidden_unit_nums = (64, 32)
    output_feature_num = 10

    x = jax.random.normal(k_x, (B, C, H, W), jnp.float32)

    model = MLPNetPallas(k_p, input_feature_num, hidden_unit_nums,
                         output_feature_num)

    logits = model(x)
    jax.block_until_ready(logits)

    # Reference in plain JAX with the same bf16-weight / f32-accumulation math.
    ref = x.reshape(-1, input_feature_num).astype(jnp.float32)
    n_layers = len(model.padded_params)
    for i, (wp, bp) in enumerate(model.padded_params):
        ref = jnp.dot(ref.astype(jnp.bfloat16), wp,
                      preferred_element_type=jnp.float32) + bp
        if i < n_layers - 1:
            ref = jnp.maximum(ref, 0.0)
    ref = ref[:, :output_feature_num]

    assert logits.shape == (B, output_feature_num)
    assert jnp.allclose(logits, ref, atol=2e-2, rtol=2e-2), float(
        jnp.max(jnp.abs(logits - ref)))

    print("KERNEL_OK")
</pallas_src>

<mosaic_0001>
module attributes {stable_mosaic.version = 11 : i64} {
  func.func @_fused_mlp_kernel(%arg0: memref<2x1024xf32, #tpu.memory_space<vmem>>, %arg1: memref<1024x128xbf16, #tpu.memory_space<vmem>>, %arg2: memref<1x128xf32, #tpu.memory_space<vmem>>, %arg3: memref<128x128xbf16, #tpu.memory_space<vmem>>, %arg4: memref<1x128xf32, #tpu.memory_space<vmem>>, %arg5: memref<128x128xbf16, #tpu.memory_space<vmem>>, %arg6: memref<1x128xf32, #tpu.memory_space<vmem>>, %arg7: memref<2x128xf32, #tpu.memory_space<vmem>>) attributes {dimension_semantics = [], scalar_prefetch = 0 : i64, scratch_operands = 0 : i64, tpu.core_type = #tpu.core_type<tc>} {
    %c0 = arith.constant 0 : index
    %c0_0 = arith.constant 0 : index
    %0 = vector.load %arg0[%c0, %c0_0] : memref<2x1024xf32, #tpu.memory_space<vmem>>, vector<2x1024xf32>
    %c0_1 = arith.constant 0 : index
    %c0_2 = arith.constant 0 : index
    %1 = vector.load %arg1[%c0_1, %c0_2] : memref<1024x128xbf16, #tpu.memory_space<vmem>>, vector<1024x128xbf16>
    %c0_3 = arith.constant 0 : index
    %c0_4 = arith.constant 0 : index
    %2 = vector.load %arg2[%c0_3, %c0_4] : memref<1x128xf32, #tpu.memory_space<vmem>>, vector<1x128xf32>
    %3 = arith.truncf %0 : vector<2x1024xf32> to vector<2x1024xbf16>
    %cst = arith.constant dense<0.000000e+00> : vector<2x128xf32>
    %4 = tpu.matmul %3, %1, %cst {dimension_numbers = #tpu.dot_dimension_numbers<[1], [0], [0], [1], [0, 0, 1, 1], [], []>} : vector<2x1024xbf16>, vector<1024x128xbf16>, vector<2x128xf32> -> vector<2x128xf32>
    %5 = vector.broadcast %2 : vector<1x128xf32> to vector<2x128xf32>
    %6 = arith.addf %4, %5 : vector<2x128xf32>
    %cst_5 = arith.constant 0.000000e+00 : f32
    %7 = vector.broadcast %cst_5 : f32 to vector<2x128xf32>
    %8 = arith.maximumf %6, %7 : vector<2x128xf32>
    %c0_6 = arith.constant 0 : index
    %c0_7 = arith.constant 0 : index
    %9 = vector.load %arg3[%c0_6, %c0_7] : memref<128x128xbf16, #tpu.memory_space<vmem>>, vector<128x128xbf16>
    %c0_8 = arith.constant 0 : index
    %c0_9 = arith.constant 0 : index
    %10 = vector.load %arg4[%c0_8, %c0_9] : memref<1x128xf32, #tpu.memory_space<vmem>>, vector<1x128xf32>
    %11 = arith.truncf %8 : vector<2x128xf32> to vector<2x128xbf16>
    %cst_10 = arith.constant dense<0.000000e+00> : vector<2x128xf32>
    %12 = tpu.matmul %11, %9, %cst_10 {dimension_numbers = #tpu.dot_dimension_numbers<[1], [0], [0], [1], [0, 0, 1, 1], [], []>} : vector<2x128xbf16>, vector<128x128xbf16>, vector<2x128xf32> -> vector<2x128xf32>
    %13 = vector.broadcast %10 : vector<1x128xf32> to vector<2x128xf32>
    %14 = arith.addf %12, %13 : vector<2x128xf32>
    %cst_11 = arith.constant 0.000000e+00 : f32
    %15 = vector.broadcast %cst_11 : f32 to vector<2x128xf32>
    %16 = arith.maximumf %14, %15 : vector<2x128xf32>
    %c0_12 = arith.constant 0 : index
    %c0_13 = arith.constant 0 : index
    %17 = vector.load %arg5[%c0_12, %c0_13] : memref<128x128xbf16, #tpu.memory_space<vmem>>, vector<128x128xbf16>
    %c0_14 = arith.constant 0 : index
    %c0_15 = arith.constant 0 : index
    %18 = vector.load %arg6[%c0_14, %c0_15] : memref<1x128xf32, #tpu.memory_space<vmem>>, vector<1x128xf32>
    %19 = arith.truncf %16 : vector<2x128xf32> to vector<2x128xbf16>
    %cst_16 = arith.constant dense<0.000000e+00> : vector<2x128xf32>
    %20 = tpu.matmul %19, %17, %cst_16 {dimension_numbers = #tpu.dot_dimension_numbers<[1], [0], [0], [1], [0, 0, 1, 1], [], []>} : vector<2x128xbf16>, vector<128x128xbf16>, vector<2x128xf32> -> vector<2x128xf32>
    %21 = vector.broadcast %18 : vector<1x128xf32> to vector<2x128xf32>
    %22 = arith.addf %20, %21 : vector<2x128xf32>
    %c0_17 = arith.constant 0 : index
    %c0_18 = arith.constant 0 : index
    %23 = vector.load %arg7[%c0_17, %c0_18] : memref<2x128xf32, #tpu.memory_space<vmem>>, vector<2x128xf32>
    tpu.vector_store %arg7[%c0_17, %c0_18], %22 {strides = array<i32>} : memref<2x128xf32, #tpu.memory_space<vmem>>, vector<2x128xf32>,
    return
  }
}

</mosaic_0001>

<bundles_post_ra>
// kernel: _forward_impl.1
= control target key start
LH: loop header
LB: loop body
LE: loop exit
PB: predicated region body
PF: predicated region fallthrough
CT: control target
= control target key end

     0   :  { %12 = vsyncpa [#allocation3], 0  ;;  %s1519_s0 = inlined_call_operand.vmem [shape: f32[2,1024], index: 0, kind: input, shape index: {}]   ;;  %s1520_s1 = inlined_call_operand.hbm [shape: bf16[1024,128], index: 1, kind: input, shape index: {}]   ;;  %s1521_s2 = inlined_call_operand.vmem [shape: f32[1,128], index: 2, kind: input, shape index: {}]   ;;  %s1522_s3 = inlined_call_operand.vmem [shape: bf16[128,128], index: 3, kind: input, shape index: {}]   ;;  %s1523_s4 = inlined_call_operand.vmem [shape: f32[1,128], index: 4, kind: input, shape index: {}]   ;;  %s1524_s5 = inlined_call_operand.vmem [shape: bf16[128,128], index: 5, kind: input, shape index: {}]   ;;  %s1525_s6 = inlined_call_operand.vmem [shape: f32[1,128], index: 6, kind: input, shape index: {}]   ;;  %s1526_s7 = inlined_call_operand.hbm [shape: f32[2,128], index: 7, kind: output, shape index: {}]  }
   0x1   :  { %13 = vsyncpa [#allocation4], 0  ;;  %s1379_s24 = smov [#allocation2]  }
   0x2   :  { %s21_s25 = sshll.u32 %s1379_s24, 4  ;;  %s22_s25 = int_to_ptr.vmem [resolvable:$true] %s21_s25 }
   0x3   :  { %s1343_s26 = scalar_lea.vmem %s22_s25, 8192  ;;  %p1348_p1 = scmp.lt.s32.totalorder %s22_s25, %s22_s25 }
   0x4   :  { %p1344_p0 = scmp.ne.s32.totalorder %s22_s25, %s1343_s26  ;;  %p1349_p2 = scmp.lt.s32.totalorder %s1343_s26, %s1343_s26 }
   0x6   :  { %p1350_p3 = por %p1349_p2, %p1348_p1 }
   0x8   :  { %p1351_p4 = pnand %p1350_p3, %p1344_p0 }
   0xa   :  { %1354 = shalt.err (!%p1351_p4)
}
   0xb   :  { %s1380_s27 = smov 64   ;;  %s1381_s28 = smov 4  }
   0xc   :  { %27 = dma.hbm_to_vmem [thread:$0]  %s1520_s1, 8192, %s22_s25, [#allocation3], %s1380_s27, %s1380_s27, %s1381_s28  }
   0xd   :  { %1375 = dma.done.wait [#allocation3], 8192  }
   0xe   :  { %1376 = vsyncadd [#allocation3], 4294959104  ;;  %v1253_v0 = vld [vmem:[#allocation2 + $0x78] sm:$0xff]   ;;  %v1257_v4 = vld [vmem:[#allocation2 + $0x70] sm:$0xff]   ;;  %v1382_v22 = vmov 1983009808   ;;  %v179_v24 = vlaneseq }
   0xf   :  { %v1254_v1 = vld [vmem:[#allocation2 + $0xf8] sm:$0xff]   ;;  %1100 = vmatprep.subr.bf16.mxu0 %v1253_v0  ;;  %v1258_v5 = vld [vmem:[#allocation2 + $0xf0] sm:$0xff]   ;;  %v1261_v8 = vld [vmem:[#allocation2 + $0x68] sm:$0xff]   ;;  %v177_v23 = vunpack.c.l.s4 %v1382_v22  ;;  %vm1384_vm0 = vmmov 0   ;;  %s1385_s21 = smov [#allocation5]  }
  0x10   :  { %v1255_v2 = vld [vmem:[#allocation2 + $0x38] sm:$0xff]   ;;  %1122 = vmatprep.subr.bf16.mxu1 %v1254_v1  ;;  %v1259_v6 = vld [vmem:[#allocation2 + $0x30] sm:$0xff]   ;;  %v1262_v9 = vld [vmem:[#allocation2 + $0xe8] sm:$0xff]   ;;  %v180_v30 = vshrl.u32 %v179_v24, 7  ;;  %s1008_s22 = sshll.u32 %s1385_s21, 4  ;;  %s1009_s22 = int_to_ptr.vmem [resolvable:$true] %s1008_s22 }
  0x11   :  { %v1256_v3 = vld [vmem:[#allocation2 + $0xb8] sm:$0xff]   ;;  %1101 = vmatpush3.bf16.msra.mxu0 %v1255_v2  ;;  %v1260_v7 = vld [vmem:[#allocation2 + $0xb0] sm:$0xff]   ;;  %v1263_v10 = vld [vmem:[#allocation2 + $0x28] sm:$0xff]   ;;  %v178_v29 = vunpack.c.0.s8 %v177_v23  ;;  %p1360_p6 = scmp.lt.s32.totalorder %s1009_s22, %s1009_s22 }
  0x12   :  { %1123 = vmatpush3.bf16.msra.mxu1 %v1256_v3  ;;  %1102 = vmatprep.subr.bf16.mxu0 %v1257_v4  ;;  %v1264_v11 = vld [vmem:[#allocation2 + $0xa8] sm:$0xff]   ;;  %v1265_v12 = vld [vmem:[#allocation2 + $0x60] sm:$0xff]   ;;  %v1269_v16 = vld [vmem:[#allocation2 + $0x58] sm:$0xff]  }
  0x13   :  { %1124 = vmatprep.subr.bf16.mxu1 %v1258_v5  ;;  %v1266_v13 = vld [vmem:[#allocation2 + $0xe0] sm:$0xff]   ;;  %v1270_v17 = vld [vmem:[#allocation2 + $0xd8] sm:$0xff]   ;;  %v1273_v20 = vld [vmem:[#allocation2 + $0x50] sm:$0xff]   ;;  %v1429_v35 = vsub.s32 %v178_v29, %v180_v30 }
  0x14   :  { %v1267_v14 = vld [vmem:[#allocation2 + $0x20] sm:$0xff]   ;;  %v1271_v18 = vld [vmem:[#allocation2 + $0x18] sm:$0xff]   ;;  %v1274_v21 = vld [vmem:[#allocation2 + $0xd0] sm:$0xff]  }
  0x15   :  { %1103 = vmatpush3.bf16.msra.mxu0 %v1259_v6  ;;  %v1268_v15 = vld [vmem:[#allocation2 + $0xa0] sm:$0xff]   ;;  %v1272_v19 = vld [vmem:[#allocation2 + $0x98] sm:$0xff]   ;;  %v1275_v25 = vld [vmem:[#allocation2 + $0x10] sm:$0xff]  }
  0x16   :  { %1125 = vmatpush3.bf16.msra.mxu1 %v1260_v7  ;;  %1104 = vmatprep.subr.bf16.mxu0 %v1261_v8  ;;  %v1276_v26 = vld [vmem:[#allocation2 + $0x90] sm:$0xff]   ;;  %v1277_v27 = vld [vmem:[#allocation2 + $0x48] sm:$0xff]   ;;  %v1281_v33 = vld [vmem:[#allocation2 + $0x40] sm:$0xff]  }
  0x17   :  { %1126 = vmatprep.subr.bf16.mxu1 %v1262_v9  ;;  %v1278_v28 = vld [vmem:[#allocation2 + $0xc8] sm:$0xff]   ;;  %v1282_v34 = vld [vmem:[#allocation2 + $0xc0] sm:$0xff]   ;;  %v1286_v41 = vld [vmem:[#allocation2 + $0x178] sm:$0xff]  }
  0x18   :  { %v1279_v31 = vld [vmem:[#allocation2 + $0x8] sm:$0xff]   ;;  %v1283_v36 = vld [vmem:[#allocation2] sm:$0xff]   ;;  %v1287_v42 = vld [vmem:[#allocation2 + $0x1f8] sm:$0xff]  }
  0x19   :  { %1105 = vmatpush3.bf16.msra.mxu0 %v1263_v10  ;;  %v1280_v32 = vld [vmem:[#allocation2 + $0x88] sm:$0xff]   ;;  %v1284_v37 = vld [vmem:[#allocation2 + $0x80] sm:$0xff]   ;;  %v1288_v46 = vld [vmem:[#allocation2 + $0x138] sm:$0xff]  }
  0x1a   :  { %1127 = vmatpush3.bf16.msra.mxu1 %v1264_v11  ;;  %1106 = vmatprep.subr.bf16.mxu0 %v1265_v12  ;;  %v42_v38 = vld [vmem:[%s1519_s0] sm:$0xff]  ;;  %v1289_v49 = vld [vmem:[#allocation2 + $0x1b8] sm:$0xff]   ;;  %v1290_v51 = vld [vmem:[#allocation2 + $0x170] sm:$0xff]  }
  0x1b   :  { %1128 = vmatprep.subr.bf16.mxu1 %v1266_v13  ;;  %v182_v39 = vrot.slane %v42_v38, %v1429_v35  ;;  %v175_v40 = vcombine.high %v42_v38, %v42_v38  ;;  %v1291_v53 = vld [vmem:[#allocation2 + $0x1f0] sm:$0xff]   ;;  %v1294_v56 = vld [vmem:[#allocation2 + $0x168] sm:$0xff]   ;;  %v1298_v60 = vld [vmem:[#allocation2 + $0x160] sm:$0xff]  }
  0x1c   :  { %v1292_v54 = vld [vmem:[#allocation2 + $0x130] sm:$0xff]   ;;  %v1295_v57 = vld [vmem:[#allocation2 + $0x1e8] sm:$0xff]   ;;  %v1299_v61 = vld [vmem:[#allocation2 + $0x1e0] sm:$0xff]  }
  0x1d   :  { %1107 = vmatpush3.bf16.msra.mxu0 %v1267_v14  ;;  %v190_v43 = vcombine.high %v182_v39, %v182_v39  ;;  %v189_v44 = vrot.slane %v175_v40, %v1429_v35  ;;  %v217_v45 = vpack.c.bf16 %v182_v39, %v182_v39  ;;  %v1293_v55 = vld [vmem:[#allocation2 + $0x1b0] sm:$0xff]   ;;  %v1296_v58 = vld [vmem:[#allocation2 + $0x128] sm:$0xff]   ;;  %v1300_v62 = vld [vmem:[#allocation2 + $0x120] sm:$0xff]  }
  0x1e   :  { %1129 = vmatpush3.bf16.msra.mxu1 %v1268_v15  ;;  %1108 = vmatprep.subr.bf16.mxu0 %v1269_v16  ;;  %v1297_v59 = vld [vmem:[#allocation2 + $0x1a8] sm:$0xff]   ;;  %v1301_v63 = vld [vmem:[#allocation2 + $0x1a0] sm:$0xff]   ;;  %v1302_v0 = vld [vmem:[#allocation2 + $0x158] sm:$0xff]  }
  0x1f   :  { %1130 = vmatprep.subr.bf16.mxu1 %v1270_v17  ;;  %v218_v47 = vpack.c.bf16 %v190_v43, %v190_v43  ;;  %v191_v48 = vcombine.high %v189_v44, %v189_v44  ;;  %v219_v50 = vpack.c.bf16 %v189_v44, %v189_v44  ;;  %v1303_v1 = vld [vmem:[#allocation2 + $0x1d8] sm:$0xff]   ;;  %v1306_v4 = vld [vmem:[#allocation2 + $0x150] sm:$0xff]   ;;  %v1310_v8 = vld [vmem:[#allocation2 + $0x148] sm:$0xff]  }
  0x20   :  { %v1304_v2 = vld [vmem:[#allocation2 + $0x118] sm:$0xff]   ;;  %v1307_v5 = vld [vmem:[#allocation2 + $0x1d0] sm:$0xff]   ;;  %v1311_v9 = vld [vmem:[#allocation2 + $0x1c8] sm:$0xff]  }
  0x21   :  { %1109 = vmatpush3.bf16.msra.mxu0 %v1271_v18  ;;  %647 = vmatprep.mubr.bf16.mxu0 %v218_v47  ;;  %v220_v52 = vpack.c.bf16 %v191_v48, %v191_v48  ;;  %v1305_v3 = vld [vmem:[#allocation2 + $0x198] sm:$0xff]   ;;  %v1308_v6 = vld [vmem:[#allocation2 + $0x110] sm:$0xff]   ;;  %v1312_v10 = vld [vmem:[#allocation2 + $0x108] sm:$0xff]  }
  0x22   :  { %1131 = vmatpush3.bf16.msra.mxu1 %v1272_v19  ;;  %1110 = vmatprep.subr.bf16.mxu0 %v1273_v20  ;;  %v1309_v7 = vld [vmem:[#allocation2 + $0x190] sm:$0xff]   ;;  %v1313_v11 = vld [vmem:[#allocation2 + $0x188] sm:$0xff]   ;;  %v1314_v12 = vld [vmem:[#allocation2 + $0x140] sm:$0xff]  }
  0x23   :  { %1132 = vmatprep.subr.bf16.mxu1 %v1274_v21  ;;  %687 = vmatprep.mubr.bf16.mxu1 %v220_v52  ;;  %v1315_v13 = vld [vmem:[#allocation2 + $0x1c0] sm:$0xff]   ;;  %v43_v15 = vld [vmem:[%s1519_s0 + $0x8] sm:$0xff]  ;;  %v1331_v39 = vld [vmem:[%s1524_s5 + $0x18] sm:$0xff]  }
  0x24   :  { %v1316_v14 = vld [vmem:[#allocation2 + $0x100] sm:$0xff]   ;;  %v199_v17 = vrot.slane %v43_v15, %v1429_v35  ;;  %v192_v18 = vcombine.high %v43_v15, %v43_v15  ;;  %v1321_v29 = vld [vmem:[%s1522_s3 + $0x28] sm:$0xff]   ;;  %v1332_v40 = vld [vmem:[%s1524_s5 + $0x10] sm:$0xff]  }
  0x25   :  { %1111 = vmatpush3.bf16.msra.mxu0 %v1275_v25  ;;  %v1317_v16 = vld [vmem:[#allocation2 + $0x180] sm:$0xff]  }
  0x26   :  { %1133 = vmatpush3.bf16.msra.mxu1 %v1276_v26  ;;  %1112 = vmatprep.subr.bf16.mxu0 %v1277_v27  ;;  %v207_v19 = vcombine.high %v199_v17, %v199_v17  ;;  %v206_v20 = vrot.slane %v192_v18, %v1429_v35  ;;  %v221_v21 = vpack.c.bf16 %v199_v17, %v199_v17  ;;  %v1319_v26 = vld [vmem:[%s1522_s3 + $0x38] sm:$0xff]   ;;  %v1383_v27 = vmov 0.0   ;;  %v1322_v30 = vld [vmem:[%s1522_s3 + $0x20] sm:$0xff]  }
  0x27   :  { %1134 = vmatprep.subr.bf16.mxu1 %v1278_v28  ;;  %v1320_v28 = vld [vmem:[%s1522_s3 + $0x30] sm:$0xff]   ;;  %v1327_v35 = vld [vmem:[%s1524_s5 + $0x38] sm:$0xff]   ;;  %v1330_v38 = vld [vmem:[%s1524_s5 + $0x20] sm:$0xff]  }
  0x28   :  { %v222_v22 = vpack.c.bf16 %v207_v19, %v207_v19  ;;  %v208_v23 = vcombine.high %v206_v20, %v206_v20  ;;  %v223_v24 = vpack.c.bf16 %v206_v20, %v206_v20 }
  0x29   :  { %1113 = vmatpush3.bf16.msra.mxu0 %v1279_v31  ;;  %v1323_v31 = vld [vmem:[%s1522_s3 + $0x18] sm:$0xff]  }
  0x2a   :  { %1135 = vmatpush3.bf16.msra.mxu1 %v1280_v32  ;;  %1114 = vmatprep.subr.bf16.mxu0 %v1281_v33  ;;  %v224_v25 = vpack.c.bf16 %v208_v23, %v208_v23  ;;  %v1324_v32 = vld [vmem:[%s1522_s3 + $0x10] sm:$0xff]   ;;  %v1325_v33 = vld [vmem:[%s1522_s3 + $0x8] sm:$0xff]  }
  0x2b   :  { %1136 = vmatprep.subr.bf16.mxu1 %v1282_v34  ;;  %v1326_v34 = vld [vmem:[%s1522_s3] sm:$0xff]  }
  0x2d   :  { %1115 = vmatpush3.bf16.msra.mxu0 %v1283_v36  ;;  %v1328_v36 = vld [vmem:[%s1524_s5 + $0x30] sm:$0xff]  }
  0x2e   :  { %1137 = vmatpush3.bf16.msra.mxu1 %v1284_v37  ;;  %1144 = vmatprep.subr.bf16.mxu0 %v1286_v41  ;;  %v1329_v37 = vld [vmem:[%s1524_s5 + $0x28] sm:$0xff]  }
  0x2f   :  { %1166 = vmatprep.subr.bf16.mxu1 %v1287_v42 }
  0x30   :  { %648 = vmatmul.mubr.bf16.vlgmr.msra.gmra.mxu0 %v217_v45 }
  0x31   :  { %1145 = vmatpush3.bf16.msra.mxu0 %v1288_v46  ;;  %688 = vmatmul.mubr.bf16.vlgmr.msra.gmra.mxu1 %v219_v50  ;;  %v1017_v50 = vld [vmem:[%s1521_s2] ss:$0 sm:$0xff] }
  0x32   :  { %1146 = vmatprep.subr.bf16.mxu0 %v1290_v51  ;;  %1167 = vmatpush3.bf16.msra.mxu1 %v1289_v49 }
  0x33   :  { %1168 = vmatprep.subr.bf16.mxu1 %v1291_v53  ;;  %727 = vmatprep.mubr.bf16.mxu0 %v222_v22 }
  0x34   :  { %767 = vmatprep.mubr.bf16.mxu1 %v224_v25 }
  0x35   :  { %1147 = vmatpush3.bf16.msra.mxu0 %v1292_v54 }
  0x36   :  { %1148 = vmatprep.subr.bf16.mxu0 %v1294_v56  ;;  %1169 = vmatpush3.bf16.msra.mxu1 %v1293_v55 }
  0x37   :  { %1170 = vmatprep.subr.bf16.mxu1 %v1295_v57 }
  0x39   :  { %1149 = vmatpush3.bf16.msra.mxu0 %v1296_v58 }
  0x3a   :  { %1150 = vmatprep.subr.bf16.mxu0 %v1298_v60  ;;  %1171 = vmatpush3.bf16.msra.mxu1 %v1297_v59 }
  0x3b   :  { %1172 = vmatprep.subr.bf16.mxu1 %v1299_v61 }
  0x3d   :  { %1151 = vmatpush3.bf16.msra.mxu0 %v1300_v62 }
  0x3e   :  { %1152 = vmatprep.subr.bf16.mxu0 %v1302_v0  ;;  %1173 = vmatpush3.bf16.msra.mxu1 %v1301_v63 }
  0x3f   :  { %1174 = vmatprep.subr.bf16.mxu1 %v1303_v1 }
  0x41   :  { %1153 = vmatpush3.bf16.msra.mxu0 %v1304_v2 }
  0x42   :  { %1154 = vmatprep.subr.bf16.mxu0 %v1306_v4  ;;  %1175 = vmatpush3.bf16.msra.mxu1 %v1305_v3  ;;  %v1333_v4 = vld [vmem:[%s1524_s5 + $0x8] sm:$0xff]  }
  0x43   :  { %1176 = vmatprep.subr.bf16.mxu1 %v1307_v5  ;;  %v1334_v5 = vld [vmem:[%s1524_s5] sm:$0xff]  }
  0x45   :  { %1155 = vmatpush3.bf16.msra.mxu0 %v1308_v6  ;;  %v1082_v6 = vld [vmem:[%s1523_s4] ss:$0 sm:$0xff]  ;;  %s1355_s4 = scalar_lea.vmem %s1009_s22, 32 }
  0x46   :  { %1156 = vmatprep.subr.bf16.mxu0 %v1310_v8  ;;  %1177 = vmatpush3.bf16.msra.mxu1 %v1309_v7  ;;  %p1356_p5 = scmp.ne.s32.totalorder %s1009_s22, %s1355_s4  ;;  %p1361_p7 = scmp.lt.s32.totalorder %s1355_s4, %s1355_s4 }
  0x47   :  { %1178 = vmatprep.subr.bf16.mxu1 %v1311_v9 }
  0x48   :  { %p1362_p8 = por %p1361_p7, %p1360_p6 }
  0x49   :  { %1157 = vmatpush3.bf16.msra.mxu0 %v1312_v10 }
  0x4a   :  { %1158 = vmatprep.subr.bf16.mxu0 %v1314_v12  ;;  %1179 = vmatpush3.bf16.msra.mxu1 %v1313_v11  ;;  %p1363_p9 = pnand %p1362_p8, %p1356_p5 }
  0x4b   :  { %1180 = vmatprep.subr.bf16.mxu1 %v1315_v13 }
  0x4d   :  { %1159 = vmatpush3.bf16.msra.mxu0 %v1316_v14  ;;  %v1091_v14 = vld [vmem:[%s1525_s6] ss:$0 sm:$0xff] }
  0x4e   :  { %1181 = vmatpush3.bf16.msra.mxu1 %v1317_v16  ;;  %1206 = vmatprep.subr.bf16.mxu0 %v1383_v27 }
  0x4f   :  { %1226 = vmatprep.subr.bf16.mxu1 %v1383_v27 }
  0x50   :  { %728 = vmatmul.mubr.bf16.vlgmr.msra.gmra.mxu0 %v221_v21 }
  0x51   :  { %768 = vmatmul.mubr.bf16.vlgmr.msra.gmra.mxu1 %v223_v24  ;;  %1207 = vmatpush3.bf16.msra.mxu0 %v1319_v26 }
  0x52   :  { %1208 = vmatprep.subr.bf16.mxu0 %v1383_v27  ;;  %1222 = vmatprep.mubr.msk.bf16.mxu0 %vm1384_vm0, %v1383_v27 }
  0x53   :  { %1242 = vmatprep.mubr.msk.bf16.mxu1 %vm1384_vm0, %v1383_v27  ;;  %1227 = vmatpush3.bf16.msra.mxu1 %v1327_v35 }
  0x54   :  { %1228 = vmatprep.subr.bf16.mxu1 %v1383_v27 }
  0x55   :  { %1209 = vmatpush3.bf16.msra.mxu0 %v1320_v28 }
  0x56   :  { %1210 = vmatprep.subr.bf16.mxu0 %v1383_v27 }
  0x57   :  { %1229 = vmatpush3.bf16.msra.mxu1 %v1328_v36 }
  0x58   :  { %1230 = vmatprep.subr.bf16.mxu1 %v1383_v27 }
  0x59   :  { %1211 = vmatpush3.bf16.msra.mxu0 %v1321_v29 }
  0x5a   :  { %1212 = vmatprep.subr.bf16.mxu0 %v1383_v27 }
  0x5b   :  { %1231 = vmatpush3.bf16.msra.mxu1 %v1329_v37 }
  0x5c   :  { %1232 = vmatprep.subr.bf16.mxu1 %v1383_v27 }
  0x5d   :  { %1213 = vmatpush3.bf16.msra.mxu0 %v1322_v30 }
  0x5e   :  { %1214 = vmatprep.subr.bf16.mxu0 %v1383_v27 }
  0x5f   :  { %1233 = vmatpush3.bf16.msra.mxu1 %v1330_v38 }
  0x60   :  { %1234 = vmatprep.subr.bf16.mxu1 %v1383_v27 }
  0x61   :  { %1215 = vmatpush3.bf16.msra.mxu0 %v1323_v31 }
  0x62   :  { %1216 = vmatprep.subr.bf16.mxu0 %v1383_v27 }
  0x63   :  { %1235 = vmatpush3.bf16.msra.mxu1 %v1331_v39 }
  0x64   :  { %1236 = vmatprep.subr.bf16.mxu1 %v1383_v27 }
  0x65   :  { %1217 = vmatpush3.bf16.msra.mxu0 %v1324_v32 }
  0x66   :  { %1218 = vmatprep.subr.bf16.mxu0 %v1383_v27 }
  0x67   :  { %1237 = vmatpush3.bf16.msra.mxu1 %v1332_v40 }
  0x68   :  { %1238 = vmatprep.subr.bf16.mxu1 %v1383_v27 }
  0x69   :  { %1219 = vmatpush3.bf16.msra.mxu0 %v1325_v33 }
  0x6a   :  { %1220 = vmatprep.subr.bf16.mxu0 %v1383_v27 }
  0x6b   :  { %1239 = vmatpush3.bf16.msra.mxu1 %v1333_v4 }
  0x6c   :  { %1240 = vmatprep.subr.bf16.mxu1 %v1383_v27 }
  0x6d   :  { %1221 = vmatpush3.bf16.msra.mxu0 %v1326_v34 }
  0x6f   :  { %1241 = vmatpush3.bf16.msra.mxu1 %v1334_v5 }
  0xf0   :  { %v1116_v41 = vpop.f32.mrf.mxu0 }
  0xf1   :  { %v1138_v42 = vpop.f32.mrf.mxu1 }
  0xf2   :  { %v1117_v43 = vpop.f32.mrf.mxu0 }
  0xf3   :  { %v1139_v44 = vpop.f32.mrf.mxu1  ;;  %v1118_v49 = vadd.f32 %v1117_v43, %v1116_v41 }
  0xf4   :  { %v1119_v45 = vpop.f32.mrf.mxu0  ;;  %v1140_v52 = vadd.f32 %v1139_v44, %v1138_v42 }
  0xf5   :  { %v1141_v46 = vpop.f32.mrf.mxu1  ;;  %v650_v51 = vadd.f32 %v1118_v49, %v1017_v50 }
  0xf6   :  { %v1120_v47 = vpop.f32.mrf.mxu0 }
  0xf7   :  { %v1142_v48 = vpop.f32.mrf.mxu1  ;;  %v690_v56 = vadd.f32 %v1140_v52, %v650_v51 }
 0x110   :  { %v1160_v53 = vpop.f32.mrf.mxu0 }
 0x111   :  { %v1182_v54 = vpop.f32.mrf.mxu1 }
 0x112   :  { %v1161_v55 = vpop.f32.mrf.mxu0 }
 0x113   :  { %v1162_v57 = vadd.f32 %v1161_v55, %v1160_v53  ;;  %v1183_v58 = vpop.f32.mrf.mxu1 }
 0x114   :  { %v1163_v59 = vpop.f32.mrf.mxu0  ;;  %v1184_v61 = vadd.f32 %v1183_v58, %v1182_v54 }
 0x115   :  { %v730_v60 = vadd.f32 %v1162_v57, %v690_v56  ;;  %v1185_v62 = vpop.f32.mrf.mxu1 }
 0x116   :  { %v1164_v63 = vpop.f32.mrf.mxu0 }
 0x117   :  { %v770_v0 = vadd.f32 %v1184_v61, %v730_v60  ;;  %v1186_v1 = vpop.f32.mrf.mxu1 }
 0x119   :  { %v775_v2 = vmax.f32 %v770_v0, 0.0 }
 0x11b   :  { %v793_v3 = vpack.c.bf16 %v775_v2, %v775_v2 }
 0x11d   :  { %1223 = vmatmul.mubr.bf16.vlgmr.msra.gmra.mxu0 %v793_v3 }
 0x1dd   :  { %v882_v7 = vpop.f32.mrf.mxu0 }
 0x1de   :  { %v883_v8 = vadd.f32 %v1082_v6, %v882_v7 }
 0x1df   :  { %v1224_v9 = vpop.f32.mrf.mxu0 }
 0x1e0   :  { %v888_v10 = vmax.f32 %v883_v8, 0.0 }
 0x1e1   :  { %v885_v11 = vpop.f32.mrf.mxu0 }
 0x1e2   :  { %v906_v12 = vpack.c.bf16 %v888_v10, %v888_v10 }
 0x1e3   :  { %v1225_v13 = vpop.f32.mrf.mxu0 }
 0x1e4   :  { %1243 = vmatmul.mubr.bf16.vlgmr.msra.gmra.mxu1 %v906_v12 }
 0x2a4   :  { %v995_v15 = vpop.f32.mrf.mxu1 }
 0x2a5   :  { %v996_v16 = vadd.f32 %v1091_v14, %v995_v15 }
 0x2a6   :  { %v1244_v17 = vpop.f32.mrf.mxu1 }
 0x2a7   :  { %1001 = vst [vmem:[#allocation5] sm:$0x3] %v996_v16 }
 0x2a8   :  { %v998_v18 = vpop.f32.mrf.mxu1 }
 0x2a9   :  { %1366 = shalt.err (!%p1363_p9)
}
 0x2aa   :  { %1011 = dma.vmem_to_hbm [thread:$0]  %s1009_s22, 32, %s1526_s7, [#allocation4]   ;;  %v1245_v19 = vpop.f32.mrf.mxu1 }
 0x2ab   :  { %1377 = dma.done.wait [#allocation4], 32  }
 0x2ac   :  { %1378 = vsyncadd [#allocation4], 4294967264 }
 0x2ad   :  { %1015 = vsyncpa [#allocation3], 1 }
 0x2ae   :  { %1016 = vsyncpa [#allocation4], 1 }

</bundles_post_ra>
